<compile_context>
chip_gen: v5e
topology: v5e:2x2
jax: 0.10.0
libtpu: 0.0.40
codegen_flags: <defaults>
</compile_context>

<pallas_src>
import jax
import jax.numpy as jnp
from jax.experimental import pallas as pl
from jax.experimental.pallas import tpu as pltpu


def _comm_layer_kernel(w_ref, x_ref, o_ref):
    """w_ref: (n, 1, n, 1) f32 with w_ref[j, 0, i, 0] = W[i, j] = (T * J)[i, j].
    x_ref / o_ref: (tb, n, d) batch tile (last tile may be partial in batch).
    Computes out[b, i, :] = sum_j W[i, j] * x[b, j, :] via VPU broadcast-FMAs.
    """
    n = x_ref.shape[1]
    w = w_ref[...]  # (n, 1, n, 1), tiny, read once per grid step
    # n broadcast-FMAs: (tb, 1, d) * (1, n, 1) -> (tb, n, d), accumulated over j.
    acc = x_ref[:, 0:1, :].astype(jnp.float32) * w[0]
    for j in range(1, n):
        acc = acc + x_ref[:, j:j + 1, :].astype(jnp.float32) * w[j]
    o_ref[...] = acc.astype(o_ref.dtype)


def _pick_tiling(B, n, d, itemsize, block_b):
    """Choose the batch tile tb and a VMEM limit from the block footprint."""
    bytes_per_row = n * d * itemsize
    # VMEM budget for this generation; conservative fallback = v7x's 64 MiB/TC.
    try:
        vmem_cap = int(pltpu.get_tpu_info().vmem_capacity_bytes)
    except Exception:
        vmem_cap = 64 * 1024 * 1024

    if block_b is not None:
        # Explicit user override (also used by the demo to hit the partial-block path).
        tb = max(1, min(int(block_b), B))
    else:
        # ~2 MiB blocks already reach ~85% of the HBM roofline on v6e; bigger
        # only adds ~1% while burning VMEM.  Cap by the double-buffered
        # working set (2x in + 2x out + headroom) against this chip's VMEM.
        target_block = 2 * 1024 * 1024
        max_block = max(bytes_per_row, (int(0.6 * vmem_cap)) // 5)
        tb = max(1, min(target_block, max_block) // bytes_per_row)
        tb = min(tb, B)
        # >= 2 grid steps when possible so the "parallel" batch axis can shard
        # across v7x's two TensorCores (irrelevant on v5e/v6e: 1 TC/chip).
        if B >= 2:
            tb = min(tb, pl.cdiv(B, 2))

    block_bytes = tb * bytes_per_row
    # Double-buffered in + out blocks, the tiny W planes, plus slack.
    need = 4 * block_bytes + 2 * n * n * 4 + (2 << 20)
    vmem_limit = min(max(need, 16 << 20), max(need, int(0.9 * vmem_cap)))
    return tb, int(vmem_limit)


def comm_layer(x, T, *, block_b=None):
    """x: (B, n, d), T: (n, n) -> (B, n, d). Matches CommLayer.forward (n >= 2)."""
    B, n, d = x.shape
    if n < 2:
        raise ValueError("CommLayer requires n >= 2 agents (J uses 1/(n-1)).")
    if T.shape != (n, n):
        raise ValueError(f"T must have shape ({n}, {n}), got {T.shape}")

    # Hoisted out of the per-step body: J and W = T * J (n x n, negligible cost).
    eye = jnp.eye(n, dtype=jnp.float32)
    J = (jnp.ones((n, n), dtype=jnp.float32) - eye) * (1.0 / (n - 1)) + eye
    W = T.astype(jnp.float32) * J
    # Column j of W shaped as a (1, n, 1) broadcast plane: w_cols[j, 0, i, 0] = W[i, j].
    w_cols = jnp.transpose(W)[:, None, :, None]  # (n, 1, n, 1)

    itemsize = jnp.dtype(x.dtype).itemsize
    tb, vmem_limit = _pick_tiling(B, n, d, itemsize, block_b)
    grid = (pl.cdiv(B, tb),)  # last block may be partial; no padded copy of x

    return pl.pallas_call(
        _comm_layer_kernel,
        out_shape=jax.ShapeDtypeStruct((B, n, d), x.dtype),
        grid_spec=pltpu.PrefetchScalarGridSpec(
            num_scalar_prefetch=0,
            grid=grid,
            in_specs=[
                # W columns: same block every step -> stays resident, no re-DMA.
                pl.BlockSpec((n, 1, n, 1), lambda b: (0, 0, 0, 0)),
                pl.BlockSpec((tb, n, d), lambda b: (b, 0, 0)),  # x batch tile
            ],
            out_specs=pl.BlockSpec((tb, n, d), lambda b: (b, 0, 0)),
        ),
        compiler_params=pltpu.CompilerParams(
            dimension_semantics=("parallel",),
            vmem_limit_bytes=vmem_limit),
        cost_estimate=pl.CostEstimate(
            flops=2 * B * n * n * d,
            bytes_accessed=2 * B * n * d * itemsize + n * n * 4,
            transcendentals=0),
    )(w_cols, x)


def comm_layer_ref(x, T):
    """Pure-JAX transcription of the PyTorch forward (with the permutes)."""
    n = x.shape[1]
    h = jnp.transpose(x, (0, 2, 1))
    J = (jnp.ones((n, n)) - jnp.eye(n)) * (1.0 / (n - 1)) + jnp.eye(n)
    T_norm = T.T * J
    h_next = jnp.matmul(h, T_norm)
    return jnp.transpose(h_next, (0, 2, 1))


if __name__ == "__main__":
    B, n, d = 4, 8, 128  # batch, agents (= size_in = size_out), hidden dim

    key = jax.random.PRNGKey(0)
    kx, kt = jax.random.split(key)
    x = jax.random.normal(kx, (B, n, d), dtype=jnp.float32)

    # Module init: T = zeros(n, n) + eye(n); add a small deterministic
    # perturbation so the agent-mixing contraction is non-trivial.
    T = jnp.eye(n, dtype=jnp.float32) + 0.01 * jax.random.uniform(
        kt, (n, n), dtype=jnp.float32, minval=-1.0, maxval=1.0)

    ref = comm_layer_ref(x, T)

    # Auto-tiled path: tb derived from the block footprint / VMEM, grid >= 2 steps.
    out = jax.block_until_ready(comm_layer(x, T))
    assert out.shape == (B, n, d)
    assert jnp.allclose(out, ref, atol=1e-5, rtol=1e-5), "mismatch vs reference"

    # Partial-last-block path (tb=3 on B=4: blocks of 3 and 1, no padded copy of x).
    out_tiled = jax.block_until_ready(comm_layer(x, T, block_b=3))
    assert jnp.allclose(out_tiled, ref, atol=1e-5, rtol=1e-5), "mismatch (partial block) vs reference"

    print("KERNEL_OK")
</pallas_src>

<mosaic_0001>
module attributes {stable_mosaic.version = 11 : i64} {
  func.func @_comm_layer_kernel(%arg0: i32, %arg1: memref<8x1x8x1xf32, #tpu.memory_space<vmem>>, %arg2: memref<2x8x128xf32, #tpu.memory_space<vmem>>, %arg3: memref<2x8x128xf32, #tpu.memory_space<vmem>>) attributes {dimension_semantics = [#tpu.dimension_semantics<parallel>], iteration_bounds = array<i64: 2>, scalar_prefetch = 0 : i64, scratch_operands = 0 : i64, tpu.core_type = #tpu.core_type<tc>, window_params = [{pipeline_mode = #tpu.pipeline_mode<synchronous>, transform_indices = @transform_0, window_bounds = array<i64: 8, 1, 8, 1>}, {transform_indices = @transform_1, window_bounds = array<i64: 2, 8, 128>}, {transform_indices = @transform_2, window_bounds = array<i64: 2, 8, 128>}]} {
    %c0 = arith.constant 0 : index
    %c0_0 = arith.constant 0 : index
    %c0_1 = arith.constant 0 : index
    %c0_2 = arith.constant 0 : index
    %0 = vector.load %arg1[%c0, %c0_0, %c0_1, %c0_2] : memref<8x1x8x1xf32, #tpu.memory_space<vmem>>, vector<8x1x8x1xf32>
    %c0_3 = arith.constant 0 : index
    %c0_4 = arith.constant 0 : index
    %c0_5 = arith.constant 0 : index
    %1 = vector.load %arg2[%c0_3, %c0_4, %c0_5] : memref<2x8x128xf32, #tpu.memory_space<vmem>>, vector<2x1x128xf32>
    %2 = vector.extract_strided_slice %0 {offsets = [0, 0, 0, 0], sizes = [1, 1, 8, 1], strides = [1, 1, 1, 1]} : vector<8x1x8x1xf32> to vector<1x1x8x1xf32>
    %3 = vector.shape_cast %2 : vector<1x1x8x1xf32> to vector<1x8x1xf32>
    %4 = vector.broadcast %1 : vector<2x1x128xf32> to vector<2x8x128xf32>
    %5 = vector.broadcast %3 : vector<1x8x1xf32> to vector<2x8x128xf32>
    %6 = arith.mulf %4, %5 : vector<2x8x128xf32>
    %c0_6 = arith.constant 0 : index
    %c1 = arith.constant 1 : index
    %c0_7 = arith.constant 0 : index
    %7 = vector.load %arg2[%c0_6, %c1, %c0_7] : memref<2x8x128xf32, #tpu.memory_space<vmem>>, vector<2x1x128xf32>
    %8 = vector.extract_strided_slice %0 {offsets = [1, 0, 0, 0], sizes = [1, 1, 8, 1], strides = [1, 1, 1, 1]} : vector<8x1x8x1xf32> to vector<1x1x8x1xf32>
    %9 = vector.shape_cast %8 : vector<1x1x8x1xf32> to vector<1x8x1xf32>
    %10 = vector.broadcast %7 : vector<2x1x128xf32> to vector<2x8x128xf32>
    %11 = vector.broadcast %9 : vector<1x8x1xf32> to vector<2x8x128xf32>
    %12 = arith.mulf %10, %11 : vector<2x8x128xf32>
    %13 = arith.addf %6, %12 : vector<2x8x128xf32>
    %c0_8 = arith.constant 0 : index
    %c2 = arith.constant 2 : index
    %c0_9 = arith.constant 0 : index
    %14 = vector.load %arg2[%c0_8, %c2, %c0_9] : memref<2x8x128xf32, #tpu.memory_space<vmem>>, vector<2x1x128xf32>
    %15 = vector.extract_strided_slice %0 {offsets = [2, 0, 0, 0], sizes = [1, 1, 8, 1], strides = [1, 1, 1, 1]} : vector<8x1x8x1xf32> to vector<1x1x8x1xf32>
    %16 = vector.shape_cast %15 : vector<1x1x8x1xf32> to vector<1x8x1xf32>
    %17 = vector.broadcast %14 : vector<2x1x128xf32> to vector<2x8x128xf32>
    %18 = vector.broadcast %16 : vector<1x8x1xf32> to vector<2x8x128xf32>
    %19 = arith.mulf %17, %18 : vector<2x8x128xf32>
    %20 = arith.addf %13, %19 : vector<2x8x128xf32>
    %c0_10 = arith.constant 0 : index
    %c3 = arith.constant 3 : index
    %c0_11 = arith.constant 0 : index
    %21 = vector.load %arg2[%c0_10, %c3, %c0_11] : memref<2x8x128xf32, #tpu.memory_space<vmem>>, vector<2x1x128xf32>
    %22 = vector.extract_strided_slice %0 {offsets = [3, 0, 0, 0], sizes = [1, 1, 8, 1], strides = [1, 1, 1, 1]} : vector<8x1x8x1xf32> to vector<1x1x8x1xf32>
    %23 = vector.shape_cast %22 : vector<1x1x8x1xf32> to vector<1x8x1xf32>
    %24 = vector.broadcast %21 : vector<2x1x128xf32> to vector<2x8x128xf32>
    %25 = vector.broadcast %23 : vector<1x8x1xf32> to vector<2x8x128xf32>
    %26 = arith.mulf %24, %25 : vector<2x8x128xf32>
    %27 = arith.addf %20, %26 : vector<2x8x128xf32>
    %c0_12 = arith.constant 0 : index
    %c4 = arith.constant 4 : index
    %c0_13 = arith.constant 0 : index
    %28 = vector.load %arg2[%c0_12, %c4, %c0_13] : memref<2x8x128xf32, #tpu.memory_space<vmem>>, vector<2x1x128xf32>
    %29 = vector.extract_strided_slice %0 {offsets = [4, 0, 0, 0], sizes = [1, 1, 8, 1], strides = [1, 1, 1, 1]} : vector<8x1x8x1xf32> to vector<1x1x8x1xf32>
    %30 = vector.shape_cast %29 : vector<1x1x8x1xf32> to vector<1x8x1xf32>
    %31 = vector.broadcast %28 : vector<2x1x128xf32> to vector<2x8x128xf32>
    %32 = vector.broadcast %30 : vector<1x8x1xf32> to vector<2x8x128xf32>
    %33 = arith.mulf %31, %32 : vector<2x8x128xf32>
    %34 = arith.addf %27, %33 : vector<2x8x128xf32>
    %c0_14 = arith.constant 0 : index
    %c5 = arith.constant 5 : index
    %c0_15 = arith.constant 0 : index
    %35 = vector.load %arg2[%c0_14, %c5, %c0_15] : memref<2x8x128xf32, #tpu.memory_space<vmem>>, vector<2x1x128xf32>
    %36 = vector.extract_strided_slice %0 {offsets = [5, 0, 0, 0], sizes = [1, 1, 8, 1], strides = [1, 1, 1, 1]} : vector<8x1x8x1xf32> to vector<1x1x8x1xf32>
    %37 = vector.shape_cast %36 : vector<1x1x8x1xf32> to vector<1x8x1xf32>
    %38 = vector.broadcast %35 : vector<2x1x128xf32> to vector<2x8x128xf32>
    %39 = vector.broadcast %37 : vector<1x8x1xf32> to vector<2x8x128xf32>
    %40 = arith.mulf %38, %39 : vector<2x8x128xf32>
    %41 = arith.addf %34, %40 : vector<2x8x128xf32>
    %c0_16 = arith.constant 0 : index
    %c6 = arith.constant 6 : index
    %c0_17 = arith.constant 0 : index
    %42 = vector.load %arg2[%c0_16, %c6, %c0_17] : memref<2x8x128xf32, #tpu.memory_space<vmem>>, vector<2x1x128xf32>
    %43 = vector.extract_strided_slice %0 {offsets = [6, 0, 0, 0], sizes = [1, 1, 8, 1], strides = [1, 1, 1, 1]} : vector<8x1x8x1xf32> to vector<1x1x8x1xf32>
    %44 = vector.shape_cast %43 : vector<1x1x8x1xf32> to vector<1x8x1xf32>
    %45 = vector.broadcast %42 : vector<2x1x128xf32> to vector<2x8x128xf32>
    %46 = vector.broadcast %44 : vector<1x8x1xf32> to vector<2x8x128xf32>
    %47 = arith.mulf %45, %46 : vector<2x8x128xf32>
    %48 = arith.addf %41, %47 : vector<2x8x128xf32>
    %c0_18 = arith.constant 0 : index
    %c7 = arith.constant 7 : index
    %c0_19 = arith.constant 0 : index
    %49 = vector.load %arg2[%c0_18, %c7, %c0_19] : memref<2x8x128xf32, #tpu.memory_space<vmem>>, vector<2x1x128xf32>
    %50 = vector.extract_strided_slice %0 {offsets = [7, 0, 0, 0], sizes = [1, 1, 8, 1], strides = [1, 1, 1, 1]} : vector<8x1x8x1xf32> to vector<1x1x8x1xf32>
    %51 = vector.shape_cast %50 : vector<1x1x8x1xf32> to vector<1x8x1xf32>
    %52 = vector.broadcast %49 : vector<2x1x128xf32> to vector<2x8x128xf32>
    %53 = vector.broadcast %51 : vector<1x8x1xf32> to vector<2x8x128xf32>
    %54 = arith.mulf %52, %53 : vector<2x8x128xf32>
    %55 = arith.addf %48, %54 : vector<2x8x128xf32>
    %c0_20 = arith.constant 0 : index
    %c0_21 = arith.constant 0 : index
    %c0_22 = arith.constant 0 : index
    %56 = vector.load %arg3[%c0_20, %c0_21, %c0_22] : memref<2x8x128xf32, #tpu.memory_space<vmem>>, vector<2x8x128xf32>
    tpu.vector_store %arg3[%c0_20, %c0_21, %c0_22], %55 {strides = array<i32>} : memref<2x8x128xf32, #tpu.memory_space<vmem>>, vector<2x8x128xf32>,
    return
  }
  func.func @transform_0(%arg0: i32) -> (i32, i32, i32, i32) {
    %c0_i32 = arith.constant 0 : i32
    %c0_i32_0 = arith.constant 0 : i32
    %c0_i32_1 = arith.constant 0 : i32
    %c0_i32_2 = arith.constant 0 : i32
    %c0_i32_3 = arith.constant 0 : i32
    return %c0_i32, %c0_i32_0, %c0_i32_1, %c0_i32_2 : i32, i32, i32, i32
  }
  func.func @transform_1(%arg0: i32) -> (i32, i32, i32) {
    %c0_i32 = arith.constant 0 : i32
    %c0_i32_0 = arith.constant 0 : i32
    %c0_i32_1 = arith.constant 0 : i32
    return %arg0, %c0_i32, %c0_i32_0 : i32, i32, i32
  }
  func.func @transform_2(%arg0: i32) -> (i32, i32, i32) {
    %c0_i32 = arith.constant 0 : i32
    %c0_i32_0 = arith.constant 0 : i32
    %c0_i32_1 = arith.constant 0 : i32
    return %arg0, %c0_i32, %c0_i32_0 : i32, i32, i32
  }
}

</mosaic_0001>

<bundles_post_ra>
// kernel: tpu_custom_call.1
= control target key start
LH: loop header
LB: loop body
LE: loop exit
PB: predicated region body
PF: predicated region fallthrough
CT: control target
= control target key end

     0   :  { %7 = vsyncpa [#allocation3], 0  ;;  %s621_s0 = inlined_call_operand.vmem [shape: f32[8,1,8,1], index: 0, kind: input, shape index: {}]   ;;  %s622_s1 = inlined_call_operand.vmem [shape: f32[4,8,128], index: 1, kind: input, shape index: {}]   ;;  %s623_s2 = inlined_call_operand.hbm [shape: f32[4,8,128], index: 2, kind: output, shape index: {}]  }
   0x1   :  { %9 = vsyncpa [#allocation3 + $0x1], 0  ;;  %s491_s9 = smov 0   ;;  %s493_s10 = smov 0  }
   0x2   :  { %s495_s11 = smov 0   ;;  %s497_s12 = smov 0  }
   0x3 LB: > { %s512_s13 = sadd.s32 4294967295, %s471_s12   ;;  %s335_s14 = sadd.s32 4294967294, %s471_s12   ;;  %s471_s12 = sphi %s497_s12, %s629_s12   ;;  %s467_s11 = sphi %s495_s11, %s628_s11   ;;  %s463_s10 = sphi %s493_s10, %s627_s10   ;;  %s459_s9 = sphi %s491_s9, %s626_s9  }
   0x4   : > { %s516_s15 = sadd.s32 1, %s471_s12   ;;  %s69_s16 = sadd.s32 1, %s467_s11 }
   0x5   : > { %s66_s17 = ssub.s32 %s471_s12, %s516_s15  ;;  %p79_p0 = scmp.ne.s32.totalorder %s467_s11, %s463_s10 }
   0x6   : > { %p67_p1 = scmp.eq.s32.totalorder %s66_s17, 0  ;;  %p80_p2 = scmp.eq.s32.totalorder %s512_s13, 1 }
   0x7   : > { %p85_p3 = scmp.ne.s32.totalorder %s463_s10, %s459_s9  ;;  %p86_p4 = scmp.eq.s32.totalorder %s335_s14, 1 }
   0x8   : > { %s527_s18 = scalar_select %p67_p1, %s467_s11, %s69_s16  }
   0x9   : > { %p529_p5 = por %p80_p2, %p79_p0  ;;  %p533_p6 = por %p86_p4, %p85_p3 }
   0xa   : > { %p338_p7 = scmp.ge.s32.totalorder %s471_s12, 1  ;;  %p116_p8 = scmp.lt.s32.totalorder %s471_s12, 3 }
   0xc   : > { %p117_p9 = pnand %p338_p7, %p116_p8 }
   0xd   : > { %s340_s25 = sshll.u32 (!%p117_p9), %s512_s13, 1  ;;  %s135_s23 = sand.u32 (!%p117_p9), 1, %s463_s10  }
   0xe   : > { %120 = sbr.rel (%p117_p9) target bundleno = 165 (0xa5), region = 28  ;;  %p139_p10 = scmp.lt.s32.totalorder (!%p117_p9), %s340_s25, 3 }
   0xf   : > { %s339_s24 = sshll.u32 (!%p117_p9), %s135_s23, 4  ;;  %s258_s3 = scalar_lea.sflag (!%p117_p9), [#allocation3], %s135_s23 }
  0x10   : > { %s429_s8 = scalar_lea.hbm (!%p117_p9), %s623_s2, 32 }
  0x13   : > { %v147_v0 = vld [vmem:[%s621_s0 + $0x10] sm:$0xff]  ;;  %v145_v1 = vld [vmem:[%s621_s0] sm:$0xff]  ;;  %v473_v2 = vmov 0   ;;  %s631_s25 = smov (!%p139_p10, %s340_s25), 3  ;;  %v148_v4 = vld [vmem:[%s621_s0 + $0x18] sm:$0xff] }
  0x14   : > { %391 = vset.pattern.permute.xlu1 %v473_v2  ;;  %390 = vset.pattern.permute.xlu0 %v473_v2  ;;  %v149_v3 = vld [vmem:[%s621_s0 + $0x20] sm:$0xff]  ;;  %s341_s28 = sshll.u32 %s631_s25, 3  ;;  %v146_v5 = vld [vmem:[%s621_s0 + $0x8] sm:$0xff]  ;;  %v152_v7 = vld [vmem:[%s621_s0 + $0x38] sm:$0xff]  ;;  %s347_s25 = sshll.u32 %s512_s13, 4 }
  0x15   : > { %183 = vperm.xlu1 %391, %v147_v0   ;;  %159 = vperm.xlu0 %390, %v145_v1   ;;  %s558_s7 = scalar_lea.vmem %s622_s1, %s341_s28  ;;  %v150_v6 = vld [vmem:[%s621_s0 + $0x28] sm:$0xff]  ;;  %v151_v8 = vld [vmem:[%s621_s0 + $0x30] sm:$0xff]  ;;  %s269_s28 = scalar_lea.hbm %s623_s2, %s347_s25 }
  0x16   : > { %392 = vset.pattern.permute.xlu2 %v473_v2  ;;  %v397_v12 = vld [vmem:[%s558_s7] ss:$0 sm:$0xff]  ;;  %v398_v13 = vld [vmem:[%s558_s7 + $0x8] ss:$0 sm:$0xff]  ;;  %v403_v14 = vld [vmem:[%s558_s7 + $0x1] ss:$0 sm:$0xff] }
  0x17   : > { %209 = vperm.xlu2 %392, %v149_v3   ;;  %v404_v15 = vld [vmem:[%s558_s7 + $0x9] ss:$0 sm:$0xff]  ;;  %v395_v16 = vld [vmem:[%s558_s7 + $0x2] ss:$0 sm:$0xff]  ;;  %v396_v17 = vld [vmem:[%s558_s7 + $0xa] ss:$0 sm:$0xff] }
  0x18   : > { %v401_v22 = vld [vmem:[%s558_s7 + $0x3] ss:$0 sm:$0xff]  ;;  %v402_v23 = vld [vmem:[%s558_s7 + $0xb] ss:$0 sm:$0xff]  ;;  %v393_v26 = vld [vmem:[%s558_s7 + $0x4] ss:$0 sm:$0xff] }
  0x19   : > { %v394_v27 = vld [vmem:[%s558_s7 + $0xc] ss:$0 sm:$0xff]  ;;  %v399_v32 = vld [vmem:[%s558_s7 + $0x5] ss:$0 sm:$0xff]  ;;  %v400_v33 = vld [vmem:[%s558_s7 + $0xd] ss:$0 sm:$0xff] }
  0x1a   : > { %v407_v43 = vld [vmem:[%s558_s7 + $0x6] ss:$0 sm:$0xff]  ;;  %v408_v44 = vld [vmem:[%s558_s7 + $0xe] ss:$0 sm:$0xff]  ;;  %v405_v48 = vld [vmem:[%s558_s7 + $0x7] ss:$0 sm:$0xff] }
  0x1b   : > { %v406_v49 = vld [vmem:[%s558_s7 + $0xf] ss:$0 sm:$0xff]  ;;  %s137_s13 = scalar_lea.vmem [#allocation2], %s339_s24  ;;  %s272_s30 = sshll.u32 %s269_s28, 4  ;;  %s273_s30 = int_to_ptr.hbm [resolvable:$true] %s272_s30 }
  0x1c   : > { %s270_s29 = sshll.u32 %s137_s13, 4  ;;  %s423_s4 = sshra.s32 %s273_s30, 4  ;;  %s271_s29 = int_to_ptr.vmem [resolvable:$true] %s270_s29  ;;  %s424_s4 = int_to_ptr.hbm [resolvable:$true] %s423_s4 }
  0x1d   : > { %196 = vperm.xlu1 %391, %v148_v4   ;;  %170 = vperm.xlu0 %390, %v146_v5   ;;  %s425_s5 = scalar_lea.hbm %s424_s4, 16  ;;  %p430_p0 = scmp.lt.s32.totalorder %s424_s4, %s623_s2 }
  0x1e   : > { %p426_p11 = scmp.ne.s32.totalorder %s424_s4, %s425_s5  ;;  %p431_p1 = scmp.lt.s32.totalorder %s429_s8, %s425_s5 }
  0x1f   : > { %222 = vperm.xlu2 %392, %v150_v6  }
  0x20   : > { %p427_p12 = pnand %p426_p11, %p529_p5  ;;  %p432_p2 = por %p431_p1, %p430_p0 }
  0x22   : > { %p428_p13 = pneg %p427_p12 }
  0x24   : > { %p433_p3 = pnand %p432_p2, %p428_p13 }
  0x25   : > { %248 = vperm.xlu1 %391, %v152_v7   ;;  %235 = vperm.xlu0 %390, %v151_v8  }
  0x71   : > { %v210_v11 = vpop.permute.xlu2 %209 }
  0x72   : > { %v212_v39 = vmul.f32 %v393_v26, %v210_v11  ;;  %v213_v40 = vmul.f32 %v394_v27, %v210_v11 }
  0x79   : > { %v223_v38 = vpop.permute.xlu2 %222 }
  0x7a   : > { %v225_v46 = vmul.f32 %v399_v32, %v223_v38  ;;  %v226_v47 = vmul.f32 %v400_v33, %v223_v38 }
  0x87   : > { %v184_v9 = vpop.permute.xlu1 %183  ;;  %v160_v10 = vpop.permute.xlu0 %159 }
  0x88   : > { %v162_v20 = vmul.f32 %v397_v12, %v160_v10  ;;  %v163_v21 = vmul.f32 %v398_v13, %v160_v10  ;;  %v186_v28 = vmul.f32 %v395_v16, %v184_v9  ;;  %v187_v29 = vmul.f32 %v396_v17, %v184_v9 }
  0x8f   : > { %v197_v18 = vpop.permute.xlu1 %196  ;;  %v171_v19 = vpop.permute.xlu0 %170 }
  0x90   : > { %v173_v24 = vmul.f32 %v403_v14, %v171_v19  ;;  %v174_v25 = vmul.f32 %v404_v15, %v171_v19  ;;  %v199_v34 = vmul.f32 %v401_v22, %v197_v18  ;;  %v200_v35 = vmul.f32 %v402_v23, %v197_v18 }
  0x92   : > { %v175_v30 = vadd.f32 %v173_v24, %v162_v20  ;;  %v176_v31 = vadd.f32 %v174_v25, %v163_v21 }
  0x94   : > { %v188_v36 = vadd.f32 %v186_v28, %v175_v30  ;;  %v189_v37 = vadd.f32 %v187_v29, %v176_v31 }
  0x96   : > { %v201_v41 = vadd.f32 %v199_v34, %v188_v36  ;;  %v202_v42 = vadd.f32 %v200_v35, %v189_v37 }
  0x97   : > { %v236_v45 = vpop.permute.xlu0 %235  ;;  %v249_v52 = vpop.permute.xlu1 %248 }
  0x98   : > { %v214_v50 = vadd.f32 %v212_v39, %v201_v41  ;;  %v215_v51 = vadd.f32 %v213_v40, %v202_v42  ;;  %v238_v55 = vmul.f32 %v407_v43, %v236_v45  ;;  %v239_v56 = vmul.f32 %v408_v44, %v236_v45 }
  0x99   : > { %v251_v57 = vmul.f32 %v405_v48, %v249_v52  ;;  %v252_v58 = vmul.f32 %v406_v49, %v249_v52 }
  0x9a   : > { %v227_v53 = vadd.f32 %v225_v46, %v214_v50  ;;  %v228_v54 = vadd.f32 %v226_v47, %v215_v51 }
  0x9c   : > { %v240_v59 = vadd.f32 %v238_v55, %v227_v53  ;;  %v241_v60 = vadd.f32 %v239_v56, %v228_v54 }
  0x9e   : > { %v253_v61 = vadd.f32 %v251_v57, %v240_v59  ;;  %v254_v62 = vadd.f32 %v252_v58, %v241_v60 }
  0xa0   : > { %255 = vst [vmem:[%s137_s13] sm:$0xff] %v253_v61 }
  0xa1   : > { %256 = vst [vmem:[%s137_s13 + $0x8] sm:$0xff] %v254_v62 }
  0xa2   : > { %436 = shalt.err (!%p433_p3)
}
  0xa3   : > { %s474_s17 = smov 128   ;;  %s475_s21 = smov 8  }
  0xa4   : > { %348 = dma.vmem_to_hbm [thread:$0]  (%p529_p5), %s271_s29, 256, %s273_s30, %s258_s3, %s474_s17, %s474_s17, %s475_s21  }
  0xa5 PF: > { %p354_p4 = scmp.ge.s32.totalorder %s471_s12, 2  ;;  %s287_s22 = sand.u32 1, %s459_s9  }
  0xa6   : > { %s288_s23 = scalar_lea.sflag [#allocation3], %s287_s22 }
  0xa7   : > { %p351_p7 = pnand %p354_p4, %p533_p6 }
  0xa9   : > { %p352_p8 = pneg %p351_p7 }
  0xab   : > { %454 = dma.done.wait (%p352_p8), %s288_s23, 256  }
  0xac   : > { %456 = vsyncadd (%p352_p8), %s288_s23, 4294967040  ;;  %p12_p9 = scmp.ge.s32.totalorder %s516_s15, 4   ;;  %s626_s9 = smov %s463_s10 }
  0xad   : > { %s627_s10 = smov %s467_s11  ;;  %s628_s11 = smov %s527_s18 }
  0xae   : > { %s629_s12 = smov %s516_s15  ;;  %14 = sbr.rel (!%p12_p9) target bundleno = 3 (0x3), region = 63 }
  0xb3   :  { %294 = vsyncpa [#allocation3], 1 }
  0xb4   :  { %296 = vsyncpa [#allocation3 + $0x1], 1 }

</bundles_post_ra>
